<compile_context>
chip_gen: v7x
topology: tpu7x:2x2x1
jax: 0.10.0
libtpu: 0.0.40
codegen_flags: <defaults>
</compile_context>

<pallas_src>
import math

import jax
import jax.numpy as jnp
from jax.experimental import pallas as pl
from jax.experimental.pallas import tpu as pltpu

# ----------------------------- configuration --------------------------------
B = 8             # batch (sublane-aligned)
AUDIO_LEN = 128   # raw audio feature length fed to the encoder stub (lane-aligned)
AUDIO_DIM = 128   # audio_dim (lane-aligned)
TEXT_DIM = 128    # text_dim (glove embedding size, lane-aligned)
MLP_DIM = 128     # mlp_dim
TEMPERATURE = 0.07
AUDIO_W = 0.5

STATS_LANES = 128  # lane-dense packed scalar output row


def _vmem_spec():
    return pl.BlockSpec(memory_space=pltpu.MemorySpace.VMEM)


def _smem_spec():
    return pl.BlockSpec(memory_space=pltpu.MemorySpace.SMEM)


# ------------------------------ fused kernel ---------------------------------
def contrastive_kernel(scale_ref,                       # SMEM (1,) pre-exp'd scale
                       audio_ref, w_enc_ref, text_ref,  # VMEM inputs
                       a_w1_ref, a_b1_ref, a_w2_ref,    # audio projector (LN folded)
                       t_w1_ref, t_b1_ref, t_w2_ref,    # text projector  (LN folded)
                       stats_ref):                      # VMEM (1, 128) output
    # ---- audio encoder stub: (B, L) @ (L, audio_dim) -> CLS embedding -------
    h_audio = jnp.dot(audio_ref[...], w_enc_ref[...],
                      preferred_element_type=jnp.float32)
    h_text = text_ref[...].astype(jnp.float32)

    # ---- projector: LayerNorm -> Linear(no bias) -> ReLU -> Linear(no bias) -
    # LN gamma/beta are folded into w1 / b1 on the host:
    #   ((xn*gamma + beta) @ w1) == xn @ (diag(gamma) @ w1) + (beta @ w1)
    def projector(h, w1, b1, w2):
        mu = jnp.mean(h, axis=-1, keepdims=True)
        var = jnp.mean((h - mu) ** 2, axis=-1, keepdims=True)
        xn = (h - mu) * jax.lax.rsqrt(var + 1e-5)          # PyTorch LN eps=1e-5
        z = jnp.dot(xn, w1, preferred_element_type=jnp.float32) + b1
        z = jnp.maximum(z, 0.0)                            # ReLU (n_proj=2)
        z = jnp.dot(z, w2, preferred_element_type=jnp.float32)
        return z

    z_audio = projector(h_audio, a_w1_ref[...], a_b1_ref[...], a_w2_ref[...])
    z_text = projector(h_text, t_w1_ref[...], t_b1_ref[...], t_w2_ref[...])

    # ---- CLIP head: L2-normalize, scaled similarity, InfoNCE ----------------
    def l2_normalize(z):                                   # F.normalize, eps=1e-12
        norm = jnp.sqrt(jnp.sum(z * z, axis=-1, keepdims=True))
        return z / jnp.maximum(norm, 1e-12)

    za = l2_normalize(z_audio)
    zt = l2_normalize(z_text)

    scale = scale_ref[0]                                   # logit_scale.exp(), host-folded

    def infonce(q, k):
        # logits[i, j] = scale * <q_i, k_j>; labels = arange(n)
        logits = jax.lax.dot_general(
            q, k, (((1,), (1,)), ((), ())),
            preferred_element_type=jnp.float32) * scale    # (n, n)
        n = logits.shape[0]
        row = jax.lax.broadcasted_iota(jnp.int32, (n, n), 0)
        col = jax.lax.broadcasted_iota(jnp.int32, (n, n), 1)

        diag = jnp.sum(jnp.where(row == col, logits, 0.0),
                       axis=-1, keepdims=True)             # (n, 1) target logit
        m = jnp.max(logits, axis=-1, keepdims=True)        # (n, 1)
        lse = m + jnp.log(jnp.sum(jnp.exp(logits - m), axis=-1, keepdims=True))
        loss = jnp.mean(lse - diag, keepdims=True)         # (1, 1)

        # argmax with lowest-index tie-breaking (matches torch.argmax)
        first_max = jnp.min(jnp.where(logits >= m, col, n),
                            axis=-1, keepdims=True)        # (n, 1) int32
        row_idx = jax.lax.broadcasted_iota(jnp.int32, (n, 1), 0)
        correct = jnp.sum((first_max == row_idx).astype(jnp.float32),
                          keepdims=True)                   # (1, 1) count
        return loss, correct

    loss_a, corr_a = infonce(za, zt)   # head(h_audio, h_text)
    loss_t, corr_t = infonce(zt, za)   # head(h_text, h_audio)

    # ---- pack the four scalars into one lane-dense (1, 128) row -------------
    lane = jax.lax.broadcasted_iota(jnp.int32, (1, STATS_LANES), 1)
    stats = (jnp.where(lane == 0, loss_a, 0.0)
             + jnp.where(lane == 1, loss_t, 0.0)
             + jnp.where(lane == 2, corr_a, 0.0)
             + jnp.where(lane == 3, corr_t, 0.0))
    stats_ref[...] = stats


# ------------------------------ full forward ---------------------------------
def contrastive_forward(params, audio, text_emb):
    # Host-side folds (tiny XLA ops, done once per step under jit):
    #   * logit_scale.exp()  -> single SMEM scalar for the kernel.
    #   * LayerNorm affine   -> folded into the first projector linear.
    scale = jnp.exp(params["logit_scale"]).astype(jnp.float32)           # (1,)
    a_w1g = params["a_ln_g"][:, None] * params["a_w1"]                   # (D, M)
    a_b1 = (params["a_ln_b"][None, :] @ params["a_w1"])                  # (1, M)
    t_w1g = params["t_ln_g"][:, None] * params["t_w1"]
    t_b1 = (params["t_ln_b"][None, :] @ params["t_w1"])

    stats = pl.pallas_call(
        contrastive_kernel,
        out_shape=jax.ShapeDtypeStruct((1, STATS_LANES), jnp.float32),
        in_specs=[_smem_spec()] + [_vmem_spec()] * 9,
        out_specs=_vmem_spec(),
    )(
        scale,
        audio,
        params["w_enc"],
        text_emb,
        a_w1g, a_b1, params["a_w2"],
        t_w1g, t_b1, params["t_w2"],
    )

    loss_audio = stats[0, 0]
    loss_text = stats[0, 1]
    audio_correct = stats[0, 2]
    text_correct = stats[0, 3]
    loss = AUDIO_W * loss_audio + (1.0 - AUDIO_W) * loss_text
    return loss, audio_correct, text_correct, params["logit_scale"]


# ------------------------- deterministic parameter init ----------------------
def init_params(key):
    ks = jax.random.split(key, 8)

    def linear_w(k, fan_in, fan_out):
        bound = 1.0 / math.sqrt(fan_in)
        return jax.random.uniform(k, (fan_in, fan_out), jnp.float32,
                                  -bound, bound)

    return {
        "w_enc": linear_w(ks[0], AUDIO_LEN, AUDIO_DIM),      # encoder stub
        "a_ln_g": jnp.ones((AUDIO_DIM,), jnp.float32),
        "a_ln_b": jnp.zeros((AUDIO_DIM,), jnp.float32),
        "a_w1": linear_w(ks[1], AUDIO_DIM, MLP_DIM),
        "a_w2": linear_w(ks[2], MLP_DIM, MLP_DIM),
        "t_ln_g": jnp.ones((TEXT_DIM,), jnp.float32),
        "t_ln_b": jnp.zeros((TEXT_DIM,), jnp.float32),
        "t_w1": linear_w(ks[3], TEXT_DIM, MLP_DIM),
        "t_w2": linear_w(ks[4], MLP_DIM, MLP_DIM),
        "logit_scale": jnp.array([math.log(1.0 / TEMPERATURE)], jnp.float32),
    }


if __name__ == "__main__":
    key = jax.random.PRNGKey(0)
    k_p, k_a, k_t = jax.random.split(key, 3)

    params = init_params(k_p)
    audio = jax.random.normal(k_a, (B, AUDIO_LEN), jnp.float32)
    text_emb = jax.random.normal(k_t, (B, TEXT_DIM), jnp.float32)

    fwd = jax.jit(contrastive_forward)
    loss, audio_correct, text_correct, logit_scale = fwd(params, audio, text_emb)
    jax.block_until_ready((loss, audio_correct, text_correct, logit_scale))
    print("KERNEL_OK")
</pallas_src>

<mosaic_0001>
module attributes {stable_mosaic.version = 11 : i64} {
  func.func @contrastive_kernel(%arg0: memref<1xf32, #tpu.memory_space<smem>>, %arg1: memref<8x128xf32, #tpu.memory_space<vmem>>, %arg2: memref<128x128xf32, #tpu.memory_space<vmem>>, %arg3: memref<8x128xf32, #tpu.memory_space<vmem>>, %arg4: memref<128x128xf32, #tpu.memory_space<vmem>>, %arg5: memref<1x128xf32, #tpu.memory_space<vmem>>, %arg6: memref<128x128xf32, #tpu.memory_space<vmem>>, %arg7: memref<128x128xf32, #tpu.memory_space<vmem>>, %arg8: memref<1x128xf32, #tpu.memory_space<vmem>>, %arg9: memref<128x128xf32, #tpu.memory_space<vmem>>, %arg10: memref<1x128xf32, #tpu.memory_space<vmem>>) attributes {dimension_semantics = [], scalar_prefetch = 0 : i64, scratch_operands = 0 : i64, tpu.core_type = #tpu.core_type<tc>} {
    %c0 = arith.constant 0 : index
    %c0_0 = arith.constant 0 : index
    %0 = vector.load %arg1[%c0, %c0_0] : memref<8x128xf32, #tpu.memory_space<vmem>>, vector<8x128xf32>
    %c0_1 = arith.constant 0 : index
    %c0_2 = arith.constant 0 : index
    %1 = vector.load %arg2[%c0_1, %c0_2] : memref<128x128xf32, #tpu.memory_space<vmem>>, vector<128x128xf32>
    %cst = arith.constant dense<0.000000e+00> : vector<8x128xf32>
    %2 = tpu.matmul %0, %1, %cst {dimension_numbers = #tpu.dot_dimension_numbers<[1], [0], [0], [1], [0, 0, 1, 1], [], []>} : vector<8x128xf32>, vector<128x128xf32>, vector<8x128xf32> -> vector<8x128xf32>
    %c0_3 = arith.constant 0 : index
    %c0_4 = arith.constant 0 : index
    %3 = vector.load %arg3[%c0_3, %c0_4] : memref<8x128xf32, #tpu.memory_space<vmem>>, vector<8x128xf32>
    %c0_5 = arith.constant 0 : index
    %c0_6 = arith.constant 0 : index
    %4 = vector.load %arg4[%c0_5, %c0_6] : memref<128x128xf32, #tpu.memory_space<vmem>>, vector<128x128xf32>
    %c0_7 = arith.constant 0 : index
    %c0_8 = arith.constant 0 : index
    %5 = vector.load %arg5[%c0_7, %c0_8] : memref<1x128xf32, #tpu.memory_space<vmem>>, vector<1x128xf32>
    %c0_9 = arith.constant 0 : index
    %c0_10 = arith.constant 0 : index
    %6 = vector.load %arg6[%c0_9, %c0_10] : memref<128x128xf32, #tpu.memory_space<vmem>>, vector<128x128xf32>
    %cst_11 = arith.constant dense<0.000000e+00> : vector<8xf32>
    %7 = vector.multi_reduction <add>, %2, %cst_11 [1] : vector<8x128xf32> to vector<8xf32>
    %8 = vector.shape_cast %7 : vector<8xf32> to vector<8x1xf32>
    %cst_12 = arith.constant 1.280000e+02 : f32
    %9 = vector.broadcast %cst_12 : f32 to vector<8x1xf32>
    %10 = arith.divf %8, %9 : vector<8x1xf32>
    %11 = vector.broadcast %10 : vector<8x1xf32> to vector<8x128xf32>
    %12 = arith.subf %2, %11 : vector<8x128xf32>
    %13 = arith.mulf %12, %12 : vector<8x128xf32>
    %cst_13 = arith.constant dense<0.000000e+00> : vector<8xf32>
    %14 = vector.multi_reduction <add>, %13, %cst_13 [1] : vector<8x128xf32> to vector<8xf32>
    %15 = vector.shape_cast %14 : vector<8xf32> to vector<8x1xf32>
    %cst_14 = arith.constant 1.280000e+02 : f32
    %16 = vector.broadcast %cst_14 : f32 to vector<8x1xf32>
    %17 = arith.divf %15, %16 : vector<8x1xf32>
    %18 = vector.broadcast %10 : vector<8x1xf32> to vector<8x128xf32>
    %19 = arith.subf %2, %18 : vector<8x128xf32>
    %cst_15 = arith.constant 9.99999974E-6 : f32
    %20 = vector.broadcast %cst_15 : f32 to vector<8x1xf32>
    %21 = arith.addf %17, %20 : vector<8x1xf32>
    %22 = math.rsqrt %21 : vector<8x1xf32>
    %23 = vector.broadcast %22 : vector<8x1xf32> to vector<8x128xf32>
    %24 = arith.mulf %19, %23 : vector<8x128xf32>
    %cst_16 = arith.constant dense<0.000000e+00> : vector<8x128xf32>
    %25 = tpu.matmul %24, %4, %cst_16 {dimension_numbers = #tpu.dot_dimension_numbers<[1], [0], [0], [1], [0, 0, 1, 1], [], []>} : vector<8x128xf32>, vector<128x128xf32>, vector<8x128xf32> -> vector<8x128xf32>
    %26 = vector.broadcast %5 : vector<1x128xf32> to vector<8x128xf32>
    %27 = arith.addf %25, %26 : vector<8x128xf32>
    %cst_17 = arith.constant 0.000000e+00 : f32
    %28 = vector.broadcast %cst_17 : f32 to vector<8x128xf32>
    %29 = arith.maximumf %27, %28 : vector<8x128xf32>
    %cst_18 = arith.constant dense<0.000000e+00> : vector<8x128xf32>
    %30 = tpu.matmul %29, %6, %cst_18 {dimension_numbers = #tpu.dot_dimension_numbers<[1], [0], [0], [1], [0, 0, 1, 1], [], []>} : vector<8x128xf32>, vector<128x128xf32>, vector<8x128xf32> -> vector<8x128xf32>
    %c0_19 = arith.constant 0 : index
    %c0_20 = arith.constant 0 : index
    %31 = vector.load %arg7[%c0_19, %c0_20] : memref<128x128xf32, #tpu.memory_space<vmem>>, vector<128x128xf32>
    %c0_21 = arith.constant 0 : index
    %c0_22 = arith.constant 0 : index
    %32 = vector.load %arg8[%c0_21, %c0_22] : memref<1x128xf32, #tpu.memory_space<vmem>>, vector<1x128xf32>
    %c0_23 = arith.constant 0 : index
    %c0_24 = arith.constant 0 : index
    %33 = vector.load %arg9[%c0_23, %c0_24] : memref<128x128xf32, #tpu.memory_space<vmem>>, vector<128x128xf32>
    %cst_25 = arith.constant dense<0.000000e+00> : vector<8xf32>
    %34 = vector.multi_reduction <add>, %3, %cst_25 [1] : vector<8x128xf32> to vector<8xf32>
    %35 = vector.shape_cast %34 : vector<8xf32> to vector<8x1xf32>
    %cst_26 = arith.constant 1.280000e+02 : f32
    %36 = vector.broadcast %cst_26 : f32 to vector<8x1xf32>
    %37 = arith.divf %35, %36 : vector<8x1xf32>
    %38 = vector.broadcast %37 : vector<8x1xf32> to vector<8x128xf32>
    %39 = arith.subf %3, %38 : vector<8x128xf32>
    %40 = arith.mulf %39, %39 : vector<8x128xf32>
    %cst_27 = arith.constant dense<0.000000e+00> : vector<8xf32>
    %41 = vector.multi_reduction <add>, %40, %cst_27 [1] : vector<8x128xf32> to vector<8xf32>
    %42 = vector.shape_cast %41 : vector<8xf32> to vector<8x1xf32>
    %cst_28 = arith.constant 1.280000e+02 : f32
    %43 = vector.broadcast %cst_28 : f32 to vector<8x1xf32>
    %44 = arith.divf %42, %43 : vector<8x1xf32>
    %45 = vector.broadcast %37 : vector<8x1xf32> to vector<8x128xf32>
    %46 = arith.subf %3, %45 : vector<8x128xf32>
    %cst_29 = arith.constant 9.99999974E-6 : f32
    %47 = vector.broadcast %cst_29 : f32 to vector<8x1xf32>
    %48 = arith.addf %44, %47 : vector<8x1xf32>
    %49 = math.rsqrt %48 : vector<8x1xf32>
    %50 = vector.broadcast %49 : vector<8x1xf32> to vector<8x128xf32>
    %51 = arith.mulf %46, %50 : vector<8x128xf32>
    %cst_30 = arith.constant dense<0.000000e+00> : vector<8x128xf32>
    %52 = tpu.matmul %51, %31, %cst_30 {dimension_numbers = #tpu.dot_dimension_numbers<[1], [0], [0], [1], [0, 0, 1, 1], [], []>} : vector<8x128xf32>, vector<128x128xf32>, vector<8x128xf32> -> vector<8x128xf32>
    %53 = vector.broadcast %32 : vector<1x128xf32> to vector<8x128xf32>
    %54 = arith.addf %52, %53 : vector<8x128xf32>
    %cst_31 = arith.constant 0.000000e+00 : f32
    %55 = vector.broadcast %cst_31 : f32 to vector<8x128xf32>
    %56 = arith.maximumf %54, %55 : vector<8x128xf32>
    %cst_32 = arith.constant dense<0.000000e+00> : vector<8x128xf32>
    %57 = tpu.matmul %56, %33, %cst_32 {dimension_numbers = #tpu.dot_dimension_numbers<[1], [0], [0], [1], [0, 0, 1, 1], [], []>} : vector<8x128xf32>, vector<128x128xf32>, vector<8x128xf32> -> vector<8x128xf32>
    %58 = arith.mulf %30, %30 : vector<8x128xf32>
    %cst_33 = arith.constant dense<0.000000e+00> : vector<8xf32>
    %59 = vector.multi_reduction <add>, %58, %cst_33 [1] : vector<8x128xf32> to vector<8xf32>
    %60 = vector.shape_cast %59 : vector<8xf32> to vector<8x1xf32>
    %61 = math.sqrt %60 : vector<8x1xf32>
    %cst_34 = arith.constant 9.99999996E-13 : f32
    %62 = vector.broadcast %cst_34 : f32 to vector<8x1xf32>
    %63 = arith.maximumf %61, %62 : vector<8x1xf32>
    %64 = vector.broadcast %63 : vector<8x1xf32> to vector<8x128xf32>
    %65 = arith.divf %30, %64 : vector<8x128xf32>
    %66 = arith.mulf %57, %57 : vector<8x128xf32>
    %cst_35 = arith.constant dense<0.000000e+00> : vector<8xf32>
    %67 = vector.multi_reduction <add>, %66, %cst_35 [1] : vector<8x128xf32> to vector<8xf32>
    %68 = vector.shape_cast %67 : vector<8xf32> to vector<8x1xf32>
    %69 = math.sqrt %68 : vector<8x1xf32>
    %cst_36 = arith.constant 9.99999996E-13 : f32
    %70 = vector.broadcast %cst_36 : f32 to vector<8x1xf32>
    %71 = arith.maximumf %69, %70 : vector<8x1xf32>
    %72 = vector.broadcast %71 : vector<8x1xf32> to vector<8x128xf32>
    %73 = arith.divf %57, %72 : vector<8x128xf32>
    %c0_37 = arith.constant 0 : index
    %74 = memref.load %arg0[%c0_37] : memref<1xf32, #tpu.memory_space<smem>>
    %cst_38 = arith.constant dense<0.000000e+00> : vector<8x8xf32>
    %75 = tpu.matmul %65, %73, %cst_38 {dimension_numbers = #tpu.dot_dimension_numbers<[1], [1], [0], [0], [0, 0, 1, 0], [], []>} : vector<8x128xf32>, vector<8x128xf32>, vector<8x8xf32> -> vector<8x8xf32>
    %76 = vector.broadcast %74 : f32 to vector<8x8xf32>
    %77 = arith.mulf %75, %76 : vector<8x8xf32>
    %78 = tpu.iota {dimensions = array<i32: 0>} : vector<8x8xi32>
    %79 = tpu.iota {dimensions = array<i32: 1>} : vector<8x8xi32>
    %80 = arith.cmpi eq, %78, %79 : vector<8x8xi32>
    %cst_39 = arith.constant 0.000000e+00 : f32
    %81 = vector.broadcast %cst_39 : f32 to vector<8x8xf32>
    %82 = arith.select %80, %77, %81 : vector<8x8xi1>, vector<8x8xf32>
    %cst_40 = arith.constant dense<0.000000e+00> : vector<8xf32>
    %83 = vector.multi_reduction <add>, %82, %cst_40 [1] : vector<8x8xf32> to vector<8xf32>
    %84 = vector.shape_cast %83 : vector<8xf32> to vector<8x1xf32>
    %cst_41 = arith.constant dense<0xFF800000> : vector<8xf32>
    %85 = vector.multi_reduction <maximumf>, %77, %cst_41 [1] : vector<8x8xf32> to vector<8xf32>
    %86 = vector.shape_cast %85 : vector<8xf32> to vector<8x1xf32>
    %87 = vector.broadcast %86 : vector<8x1xf32> to vector<8x8xf32>
    %88 = arith.subf %77, %87 : vector<8x8xf32>
    %89 = math.exp %88 : vector<8x8xf32>
    %cst_42 = arith.constant dense<0.000000e+00> : vector<8xf32>
    %90 = vector.multi_reduction <add>, %89, %cst_42 [1] : vector<8x8xf32> to vector<8xf32>
    %91 = vector.shape_cast %90 : vector<8xf32> to vector<8x1xf32>
    %92 = math.log %91 : vector<8x1xf32>
    %93 = arith.addf %86, %92 : vector<8x1xf32>
    %94 = arith.subf %93, %84 : vector<8x1xf32>
    %95 = vector.shape_cast %94 : vector<8x1xf32> to vector<1x8x1xf32>
    %cst_43 = arith.constant dense<0.000000e+00> : vector<1xf32>
    %96 = vector.multi_reduction <add>, %95, %cst_43 [1, 2] : vector<1x8x1xf32> to vector<1xf32>
    %97 = vector.shape_cast %96 : vector<1xf32> to vector<1x1x1xf32>
    %98 = vector.extract %97[0, 0, 0] : f32 from vector<1x1x1xf32>
    %99 = vector.broadcast %98 : f32 to vector<1x1xf32>
    %cst_44 = arith.constant 8.000000e+00 : f32
    %100 = vector.broadcast %cst_44 : f32 to vector<1x1xf32>
    %101 = arith.divf %99, %100 : vector<1x1xf32>
    %102 = vector.broadcast %86 : vector<8x1xf32> to vector<8x8xf32>
    %103 = arith.cmpf oge, %77, %102 : vector<8x8xf32>
    %c8_i32 = arith.constant 8 : i32
    %104 = vector.broadcast %c8_i32 : i32 to vector<8x8xi32>
    %105 = arith.select %103, %79, %104 : vector<8x8xi1>, vector<8x8xi32>
    %cst_45 = arith.constant dense<2147483647> : vector<8xi32>
    %106 = vector.multi_reduction <minsi>, %105, %cst_45 [1] : vector<8x8xi32> to vector<8xi32>
    %107 = vector.shape_cast %106 : vector<8xi32> to vector<8x1xi32>
    %108 = tpu.iota {dimensions = array<i32: 0>} : vector<8x1xi32>
    %109 = arith.cmpi eq, %107, %108 : vector<8x1xi32>
    %110 = arith.extui %109 : vector<8x1xi1> to vector<8x1xi32>
    %111 = arith.sitofp %110 : vector<8x1xi32> to vector<8x1xf32>
    %112 = vector.shape_cast %111 : vector<8x1xf32> to vector<1x8x1xf32>
    %cst_46 = arith.constant dense<0.000000e+00> : vector<1xf32>
    %113 = vector.multi_reduction <add>, %112, %cst_46 [1, 2] : vector<1x8x1xf32> to vector<1xf32>
    %114 = vector.shape_cast %113 : vector<1xf32> to vector<1x1x1xf32>
    %115 = vector.extract %114[0, 0, 0] : f32 from vector<1x1x1xf32>
    %116 = vector.broadcast %115 : f32 to vector<1x1xf32>
    %cst_47 = arith.constant dense<0.000000e+00> : vector<8x8xf32>
    %117 = tpu.matmul %73, %65, %cst_47 {dimension_numbers = #tpu.dot_dimension_numbers<[1], [1], [0], [0], [0, 0, 1, 0], [], []>} : vector<8x128xf32>, vector<8x128xf32>, vector<8x8xf32> -> vector<8x8xf32>
    %118 = vector.broadcast %74 : f32 to vector<8x8xf32>
    %119 = arith.mulf %117, %118 : vector<8x8xf32>
    %120 = tpu.iota {dimensions = array<i32: 0>} : vector<8x8xi32>
    %121 = tpu.iota {dimensions = array<i32: 1>} : vector<8x8xi32>
    %122 = arith.cmpi eq, %120, %121 : vector<8x8xi32>
    %cst_48 = arith.constant 0.000000e+00 : f32
    %123 = vector.broadcast %cst_48 : f32 to vector<8x8xf32>
    %124 = arith.select %122, %119, %123 : vector<8x8xi1>, vector<8x8xf32>
    %cst_49 = arith.constant dense<0.000000e+00> : vector<8xf32>
    %125 = vector.multi_reduction <add>, %124, %cst_49 [1] : vector<8x8xf32> to vector<8xf32>
    %126 = vector.shape_cast %125 : vector<8xf32> to vector<8x1xf32>
    %cst_50 = arith.constant dense<0xFF800000> : vector<8xf32>
    %127 = vector.multi_reduction <maximumf>, %119, %cst_50 [1] : vector<8x8xf32> to vector<8xf32>
    %128 = vector.shape_cast %127 : vector<8xf32> to vector<8x1xf32>
    %129 = vector.broadcast %128 : vector<8x1xf32> to vector<8x8xf32>
    %130 = arith.subf %119, %129 : vector<8x8xf32>
    %131 = math.exp %130 : vector<8x8xf32>
    %cst_51 = arith.constant dense<0.000000e+00> : vector<8xf32>
    %132 = vector.multi_reduction <add>, %131, %cst_51 [1] : vector<8x8xf32> to vector<8xf32>
    %133 = vector.shape_cast %132 : vector<8xf32> to vector<8x1xf32>
    %134 = math.log %133 : vector<8x1xf32>
    %135 = arith.addf %128, %134 : vector<8x1xf32>
    %136 = arith.subf %135, %126 : vector<8x1xf32>
    %137 = vector.shape_cast %136 : vector<8x1xf32> to vector<1x8x1xf32>
    %cst_52 = arith.constant dense<0.000000e+00> : vector<1xf32>
    %138 = vector.multi_reduction <add>, %137, %cst_52 [1, 2] : vector<1x8x1xf32> to vector<1xf32>
    %139 = vector.shape_cast %138 : vector<1xf32> to vector<1x1x1xf32>
    %140 = vector.extract %139[0, 0, 0] : f32 from vector<1x1x1xf32>
    %141 = vector.broadcast %140 : f32 to vector<1x1xf32>
    %cst_53 = arith.constant 8.000000e+00 : f32
    %142 = vector.broadcast %cst_53 : f32 to vector<1x1xf32>
    %143 = arith.divf %141, %142 : vector<1x1xf32>
    %144 = vector.broadcast %128 : vector<8x1xf32> to vector<8x8xf32>
    %145 = arith.cmpf oge, %119, %144 : vector<8x8xf32>
    %c8_i32_54 = arith.constant 8 : i32
    %146 = vector.broadcast %c8_i32_54 : i32 to vector<8x8xi32>
    %147 = arith.select %145, %121, %146 : vector<8x8xi1>, vector<8x8xi32>
    %cst_55 = arith.constant dense<2147483647> : vector<8xi32>
    %148 = vector.multi_reduction <minsi>, %147, %cst_55 [1] : vector<8x8xi32> to vector<8xi32>
    %149 = vector.shape_cast %148 : vector<8xi32> to vector<8x1xi32>
    %150 = tpu.iota {dimensions = array<i32: 0>} : vector<8x1xi32>
    %151 = arith.cmpi eq, %149, %150 : vector<8x1xi32>
    %152 = arith.extui %151 : vector<8x1xi1> to vector<8x1xi32>
    %153 = arith.sitofp %152 : vector<8x1xi32> to vector<8x1xf32>
    %154 = vector.shape_cast %153 : vector<8x1xf32> to vector<1x8x1xf32>
    %cst_56 = arith.constant dense<0.000000e+00> : vector<1xf32>
    %155 = vector.multi_reduction <add>, %154, %cst_56 [1, 2] : vector<1x8x1xf32> to vector<1xf32>
    %156 = vector.shape_cast %155 : vector<1xf32> to vector<1x1x1xf32>
    %157 = vector.extract %156[0, 0, 0] : f32 from vector<1x1x1xf32>
    %158 = vector.broadcast %157 : f32 to vector<1x1xf32>
    %159 = tpu.iota {dimensions = array<i32: 1>} : vector<1x128xi32>
    %c0_i32 = arith.constant 0 : i32
    %160 = vector.broadcast %c0_i32 : i32 to vector<1x128xi32>
    %161 = arith.cmpi eq, %159, %160 : vector<1x128xi32>
    %cst_57 = arith.constant 0.000000e+00 : f32
    %162 = vector.shape_cast %101 : vector<1x1xf32> to vector<1x1xf32>
    %163 = vector.broadcast %162 : vector<1x1xf32> to vector<1x128xf32>
    %164 = vector.broadcast %cst_57 : f32 to vector<1x128xf32>
    %165 = arith.select %161, %163, %164 : vector<1x128xi1>, vector<1x128xf32>
    %c1_i32 = arith.constant 1 : i32
    %166 = vector.broadcast %c1_i32 : i32 to vector<1x128xi32>
    %167 = arith.cmpi eq, %159, %166 : vector<1x128xi32>
    %cst_58 = arith.constant 0.000000e+00 : f32
    %168 = vector.shape_cast %143 : vector<1x1xf32> to vector<1x1xf32>
    %169 = vector.broadcast %168 : vector<1x1xf32> to vector<1x128xf32>
    %170 = vector.broadcast %cst_58 : f32 to vector<1x128xf32>
    %171 = arith.select %167, %169, %170 : vector<1x128xi1>, vector<1x128xf32>
    %172 = arith.addf %165, %171 : vector<1x128xf32>
    %c2_i32 = arith.constant 2 : i32
    %173 = vector.broadcast %c2_i32 : i32 to vector<1x128xi32>
    %174 = arith.cmpi eq, %159, %173 : vector<1x128xi32>
    %cst_59 = arith.constant 0.000000e+00 : f32
    %175 = vector.shape_cast %116 : vector<1x1xf32> to vector<1x1xf32>
    %176 = vector.broadcast %175 : vector<1x1xf32> to vector<1x128xf32>
    %177 = vector.broadcast %cst_59 : f32 to vector<1x128xf32>
    %178 = arith.select %174, %176, %177 : vector<1x128xi1>, vector<1x128xf32>
    %179 = arith.addf %172, %178 : vector<1x128xf32>
    %c3_i32 = arith.constant 3 : i32
    %180 = vector.broadcast %c3_i32 : i32 to vector<1x128xi32>
    %181 = arith.cmpi eq, %159, %180 : vector<1x128xi32>
    %cst_60 = arith.constant 0.000000e+00 : f32
    %182 = vector.shape_cast %158 : vector<1x1xf32> to vector<1x1xf32>
    %183 = vector.broadcast %182 : vector<1x1xf32> to vector<1x128xf32>
    %184 = vector.broadcast %cst_60 : f32 to vector<1x128xf32>
    %185 = arith.select %181, %183, %184 : vector<1x128xi1>, vector<1x128xf32>
    %186 = arith.addf %179, %185 : vector<1x128xf32>
    %c0_61 = arith.constant 0 : index
    %c0_62 = arith.constant 0 : index
    %187 = vector.load %arg10[%c0_61, %c0_62] : memref<1x128xf32, #tpu.memory_space<vmem>>, vector<1x128xf32>
    tpu.vector_store %arg10[%c0_61, %c0_62], %186 {strides = array<i32>} : memref<1x128xf32, #tpu.memory_space<vmem>>, vector<1x128xf32>,
    return
  }
}

</mosaic_0001>

<bundles_post_ra>
// kernel: contrastive_forward.1
= control target key start
LH: loop header
LB: loop body
LE: loop exit
PB: predicated region body
PF: predicated region fallthrough
CT: control target
= control target key end

     0   :  { %v1250_v0 = vmov 0.0|0.0   ;;  %vm1251_vm0 = vmmov 0   ;;  %v1252_v4 = vmov 0.0   ;;  %vm612_vm5 = vcmask 64512   ;;  %s1655_s2 = inlined_call_operand.vmem [shape: f32[128,128], index: 2, kind: input, shape index: {}]   ;;  %s1656_s1 = inlined_call_operand.vmem [shape: f32[8,128], index: 1, kind: input, shape index: {}]   ;;  %s1657_s3 = inlined_call_operand.vmem [shape: f32[8,128], index: 3, kind: input, shape index: {}]   ;;  %s1658_s4 = inlined_call_operand.vmem [shape: f32[128,128], index: 4, kind: input, shape index: {}]   ;;  %s1659_s6 = inlined_call_operand.vmem [shape: f32[128,128], index: 6, kind: input, shape index: {}]   ;;  %s1660_s7 = inlined_call_operand.vmem [shape: f32[128,128], index: 7, kind: input, shape index: {}]   ;;  %s1661_s5 = inlined_call_operand.vmem [shape: f32[1,128], index: 5, kind: input, shape index: {}]   ;;  %s1662_s9 = inlined_call_operand.vmem [shape: f32[128,128], index: 9, kind: input, shape index: {}]   ;;  %s1663_s8 = inlined_call_operand.vmem [shape: f32[1,128], index: 8, kind: input, shape index: {}]   ;;  %s1664_s0 = inlined_call_operand.<no memory space> [shape: f32[1], index: 0, kind: input, shape index: {}]   ;;  %s1665_s10 = inlined_call_operand.vmem [shape: f32[1,128], index: 10, kind: output, shape index: {}]  }
   0x1   :  { %1099 = vmatprep.subr.bf16.mxu0 %v1250_v0  ;;  %v37_v1 = vld [vmem:[%s1655_s2] sm:$0xff]  ;;  %v38_v2 = vld [vmem:[%s1655_s2 + $0x8] sm:$0xff]  ;;  %v39_v3 = vld [vmem:[%s1655_s2 + $0x10] sm:$0xff]  ;;  %946 = vmatprep.mubr.msk.f32.mxu0 %vm1251_vm0, %v1252_v4  ;;  %vm629_vm11 = vcmask 7168  }
   0x2   :  { %v1100_v5 = vpack.c.bf16 %v38_v2, %v37_v1  ;;  %v40_v6 = vld [vmem:[%s1655_s2 + $0x18] sm:$0xff]  ;;  %1123 = vmatprep.subr.bf16.mxu1 %v1250_v0  ;;  %981 = vmatprep.mubr.msk.f32.mxu1 %vm1251_vm0, %v1252_v4  ;;  %v41_v8 = vld [vmem:[%s1655_s2 + $0x20] sm:$0xff]  ;;  %v42_v9 = vld [vmem:[%s1655_s2 + $0x28] sm:$0xff] }
   0x3   :  { %v1103_v7 = vpack.c.bf16 %v40_v6, %v39_v3  ;;  %v1106_v10 = vpack.c.bf16 %v42_v9, %v41_v8  ;;  %v43_v11 = vld [vmem:[%s1655_s2 + $0x30] sm:$0xff]  ;;  %v44_v12 = vld [vmem:[%s1655_s2 + $0x38] sm:$0xff]  ;;  %v45_v14 = vld [vmem:[%s1655_s2 + $0x40] sm:$0xff] }
   0x4   :  { %1101 = vmatpush3.bf16.msra.mxu0 %v1100_v5  ;;  %v1109_v13 = vpack.c.bf16 %v44_v12, %v43_v11  ;;  %v46_v15 = vld [vmem:[%s1655_s2 + $0x48] sm:$0xff]  ;;  %v47_v17 = vld [vmem:[%s1655_s2 + $0x50] sm:$0xff]  ;;  %v48_v18 = vld [vmem:[%s1655_s2 + $0x58] sm:$0xff] }
   0x5   :  { %1102 = vmatprep.subr.bf16.mxu0 %v1250_v0  ;;  %v1112_v16 = vpack.c.bf16 %v46_v15, %v45_v14  ;;  %v1115_v19 = vpack.c.bf16 %v48_v18, %v47_v17  ;;  %v49_v20 = vld [vmem:[%s1655_s2 + $0x60] sm:$0xff]  ;;  %v50_v21 = vld [vmem:[%s1655_s2 + $0x68] sm:$0xff]  ;;  %v51_v23 = vld [vmem:[%s1655_s2 + $0x70] sm:$0xff] }
   0x6   :  { %v1118_v22 = vpack.c.bf16 %v50_v21, %v49_v20  ;;  %v52_v24 = vld [vmem:[%s1655_s2 + $0x78] sm:$0xff]  ;;  %v36_v26 = vld [vmem:[%s1656_s1] sm:$0xff]  ;;  %v125_v31 = vld [vmem:[%s1658_s4 + $0x8] sm:$0xff] }
   0x7   :  { %v1121_v25 = vpack.c.bf16 %v52_v24, %v51_v23  ;;  %v123_v29 = vld [vmem:[%s1657_s3] sm:$0xff]  ;;  %v126_v32 = vld [vmem:[%s1658_s4 + $0x10] sm:$0xff]  ;;  %v127_v34 = vld [vmem:[%s1658_s4 + $0x18] sm:$0xff] }
   0x8   :  { %1104 = vmatpush3.bf16.msra.mxu0 %v1103_v7  ;;  %v124_v30 = vld [vmem:[%s1658_s4] sm:$0xff]  ;;  %v1127_v35 = vpack.c.bf16 %v127_v34, %v126_v32  ;;  %v129_v37 = vld [vmem:[%s1658_s4 + $0x28] sm:$0xff]  ;;  %v130_v39 = vld [vmem:[%s1658_s4 + $0x30] sm:$0xff] }
   0x9   :  { %1105 = vmatprep.subr.bf16.mxu0 %v1250_v0  ;;  %v1124_v33 = vpack.c.bf16 %v125_v31, %v124_v30  ;;  %v128_v36 = vld [vmem:[%s1658_s4 + $0x20] sm:$0xff]  ;;  %v131_v40 = vld [vmem:[%s1658_s4 + $0x38] sm:$0xff]  ;;  %v133_v51 = vld [vmem:[%s1658_s4 + $0x48] sm:$0xff] }
   0xa   :  { %v1130_v38 = vpack.c.bf16 %v129_v37, %v128_v36  ;;  %v1133_v41 = vpack.c.bf16 %v131_v40, %v130_v39  ;;  %v132_v50 = vld [vmem:[%s1658_s4 + $0x40] sm:$0xff]  ;;  %v134_v53 = vld [vmem:[%s1658_s4 + $0x50] sm:$0xff]  ;;  %v135_v54 = vld [vmem:[%s1658_s4 + $0x58] sm:$0xff] }
   0xb   :  { %1125 = vmatpush3.bf16.msra.mxu1 %v1124_v33  ;;  %v1136_v52 = vpack.c.bf16 %v133_v51, %v132_v50  ;;  %v1139_v55 = vpack.c.bf16 %v135_v54, %v134_v53  ;;  %v136_v56 = vld [vmem:[%s1658_s4 + $0x60] sm:$0xff]  ;;  %v137_v57 = vld [vmem:[%s1658_s4 + $0x68] sm:$0xff]  ;;  %v138_v59 = vld [vmem:[%s1658_s4 + $0x70] sm:$0xff] }
   0xc   :  { %1107 = vmatpush3.bf16.msra.mxu0 %v1106_v10  ;;  %1126 = vmatprep.subr.bf16.mxu1 %v1250_v0  ;;  %v1142_v58 = vpack.c.bf16 %v137_v57, %v136_v56  ;;  %v139_v60 = vld [vmem:[%s1658_s4 + $0x78] sm:$0xff]  ;;  %v141_v62 = vld [vmem:[%s1659_s6] sm:$0xff]  ;;  %v142_v63 = vld [vmem:[%s1659_s6 + $0x8] sm:$0xff] }
   0xd   :  { %1108 = vmatprep.subr.bf16.mxu0 %v1250_v0  ;;  %v1145_v61 = vpack.c.bf16 %v139_v60, %v138_v59  ;;  %v143_v1 = vld [vmem:[%s1659_s6 + $0x10] sm:$0xff]  ;;  %v1148_v2 = vpack.c.bf16 %v142_v63, %v141_v62  ;;  %v144_v3 = vld [vmem:[%s1659_s6 + $0x18] sm:$0xff]  ;;  %v145_v6 = vld [vmem:[%s1659_s6 + $0x20] sm:$0xff] }
   0xe   :  { %v1151_v5 = vpack.c.bf16 %v144_v3, %v143_v1  ;;  %v146_v7 = vld [vmem:[%s1659_s6 + $0x28] sm:$0xff]  ;;  %v147_v9 = vld [vmem:[%s1659_s6 + $0x30] sm:$0xff]  ;;  %v148_v10 = vld [vmem:[%s1659_s6 + $0x38] sm:$0xff] }
   0xf   :  { %1128 = vmatpush3.bf16.msra.mxu1 %v1127_v35  ;;  %v1154_v8 = vpack.c.bf16 %v146_v7, %v145_v6  ;;  %v1157_v11 = vpack.c.bf16 %v148_v10, %v147_v9  ;;  %v149_v12 = vld [vmem:[%s1659_s6 + $0x40] sm:$0xff]  ;;  %v151_v15 = vld [vmem:[%s1659_s6 + $0x50] sm:$0xff]  ;;  %v319_v30 = vld [vmem:[%s1660_s7 + $0x18] sm:$0xff] }
  0x10   :  { %1110 = vmatpush3.bf16.msra.mxu0 %v1109_v13  ;;  %1129 = vmatprep.subr.bf16.mxu1 %v1250_v0  ;;  %v150_v13 = vld [vmem:[%s1659_s6 + $0x48] sm:$0xff]  ;;  %v153_v18 = vld [vmem:[%s1659_s6 + $0x60] sm:$0xff]  ;;  %v322_v36 = vld [vmem:[%s1660_s7 + $0x30] sm:$0xff] }
  0x11   :  { %1111 = vmatprep.subr.bf16.mxu0 %v1250_v0  ;;  %v1160_v14 = vpack.c.bf16 %v150_v13, %v149_v12  ;;  %v316_v24 = vld [vmem:[%s1660_s7] sm:$0xff]  ;;  %v321_v33 = vld [vmem:[%s1660_s7 + $0x28] sm:$0xff]  ;;  %v323_v37 = vld [vmem:[%s1660_s7 + $0x38] sm:$0xff] }
  0x12   :  { %v320_v32 = vld [vmem:[%s1660_s7 + $0x20] sm:$0xff]  ;;  %v1181_v39 = vpack.c.bf16 %v323_v37, %v322_v36  ;;  %v330_v51 = vld [vmem:[%s1660_s7 + $0x70] sm:$0xff]  ;;  %v156_v57 = vld [vmem:[%s1659_s6 + $0x78] sm:$0xff] }
  0x13   :  { %1131 = vmatpush3.bf16.msra.mxu1 %v1130_v38  ;;  %v1178_v34 = vpack.c.bf16 %v321_v33, %v320_v32  ;;  %v324_v40 = vld [vmem:[%s1660_s7 + $0x40] sm:$0xff]  ;;  %v155_v56 = vld [vmem:[%s1659_s6 + $0x70] sm:$0xff]  ;;  %v334_v60 = vld [vmem:[%s1662_s9 + $0x8] sm:$0xff] }
  0x14   :  { %1113 = vmatpush3.bf16.msra.mxu0 %v1112_v16  ;;  %1132 = vmatprep.subr.bf16.mxu1 %v1250_v0  ;;  %v152_v16 = vld [vmem:[%s1659_s6 + $0x58] sm:$0xff]  ;;  %v333_v59 = vld [vmem:[%s1662_s9] sm:$0xff]  ;;  %v335_v3 = vld [vmem:[%s1662_s9 + $0x10] sm:$0xff] }
  0x15   :  { %1114 = vmatprep.subr.bf16.mxu0 %v1250_v0  ;;  %v1163_v17 = vpack.c.bf16 %v152_v16, %v151_v15  ;;  %v1196_v1 = vpack.c.bf16 %v334_v60, %v333_v59  ;;  %v337_v7 = vld [vmem:[%s1662_s9 + $0x20] sm:$0xff]  ;;  %v339_v10 = vld [vmem:[%s1662_s9 + $0x30] sm:$0xff] }
  0x16   :  { %v341_v13 = vld [vmem:[%s1662_s9 + $0x40] sm:$0xff]  ;;  %v343_v16 = vld [vmem:[%s1662_s9 + $0x50] sm:$0xff] }
  0x17   :  { %1134 = vmatpush3.bf16.msra.mxu1 %v1133_v41  ;;  %v325_v41 = vld [vmem:[%s1660_s7 + $0x48] sm:$0xff] }
  0x18   :  { %1116 = vmatpush3.bf16.msra.mxu0 %v1115_v19  ;;  %1135 = vmatprep.subr.bf16.mxu1 %v1250_v0  ;;  %v154_v19 = vld [vmem:[%s1659_s6 + $0x68] sm:$0xff] }
  0x19   :  { %1117 = vmatprep.subr.bf16.mxu0 %v1250_v0  ;;  %v1166_v20 = vpack.c.bf16 %v154_v19, %v153_v18  ;;  %v345_v19 = vld [vmem:[%s1662_s9 + $0x60] sm:$0xff] }
  0x1b   :  { %1137 = vmatpush3.bf16.msra.mxu1 %v1136_v52  ;;  %v331_v52 = vld [vmem:[%s1660_s7 + $0x78] sm:$0xff] }
  0x1c   :  { %1119 = vmatpush3.bf16.msra.mxu0 %v1118_v22  ;;  %1138 = vmatprep.subr.bf16.mxu1 %v1250_v0  ;;  %v1193_v53 = vpack.c.bf16 %v331_v52, %v330_v51 }
  0x1d   :  { %1120 = vmatprep.subr.bf16.mxu0 %v1250_v0 }
  0x1f   :  { %1140 = vmatpush3.bf16.msra.mxu1 %v1139_v55 }
  0x20   :  { %1122 = vmatpush3.bf16.msra.mxu0 %v1121_v25  ;;  %1141 = vmatprep.subr.bf16.mxu1 %v1250_v0  ;;  %v317_v25 = vld [vmem:[%s1660_s7 + $0x8] sm:$0xff] }
  0x21   :  { %1147 = vmatprep.subr.bf16.mxu0 %v1250_v0 }
  0x23   :  { %947 = vmatmul.mubr.f32.vlgmr.msra.gmra.mrb[0].mxu0 %v36_v26  ;;  %1143 = vmatpush3.bf16.msra.mxu1 %v1142_v58  ;;  %v1169_v58 = vpack.c.bf16 %v156_v57, %v155_v56 }
  0x24   :  { %1016 = vmatprep.mubr.msk.f32.mxu0 %vm1251_vm0, %v1252_v4  ;;  %1144 = vmatprep.subr.bf16.mxu1 %v1250_v0 }
  0x25   :  { %1149 = vmatpush3.bf16.msra.mxu0 %v1148_v2 }
  0x26   :  { %1150 = vmatprep.subr.bf16.mxu0 %v1250_v0 }
  0x27   :  { %1146 = vmatpush3.bf16.msra.mxu1 %v1145_v61 }
  0x28   :  { %1171 = vmatprep.subr.bf16.mxu1 %v1250_v0 }
  0x29   :  { %1152 = vmatpush3.bf16.msra.mxu0 %v1151_v5  ;;  %v336_v5 = vld [vmem:[%s1662_s9 + $0x18] sm:$0xff] }
  0x2a   :  { %1153 = vmatprep.subr.bf16.mxu0 %v1250_v0  ;;  %v1199_v6 = vpack.c.bf16 %v336_v5, %v335_v3 }
  0x2d   :  { %1155 = vmatpush3.bf16.msra.mxu0 %v1154_v8  ;;  %v338_v8 = vld [vmem:[%s1662_s9 + $0x28] sm:$0xff] }
  0x2e   :  { %1156 = vmatprep.subr.bf16.mxu0 %v1250_v0  ;;  %v1202_v9 = vpack.c.bf16 %v338_v8, %v337_v7 }
  0x31   :  { %1158 = vmatpush3.bf16.msra.mxu0 %v1157_v11  ;;  %v340_v11 = vld [vmem:[%s1662_s9 + $0x38] sm:$0xff] }
  0x32   :  { %1159 = vmatprep.subr.bf16.mxu0 %v1250_v0  ;;  %v1205_v12 = vpack.c.bf16 %v340_v11, %v339_v10 }
  0x35   :  { %1161 = vmatpush3.bf16.msra.mxu0 %v1160_v14  ;;  %v342_v14 = vld [vmem:[%s1662_s9 + $0x48] sm:$0xff] }
  0x36   :  { %1162 = vmatprep.subr.bf16.mxu0 %v1250_v0  ;;  %v1208_v15 = vpack.c.bf16 %v342_v14, %v341_v13 }
  0x39   :  { %1164 = vmatpush3.bf16.msra.mxu0 %v1163_v17  ;;  %v344_v17 = vld [vmem:[%s1662_s9 + $0x58] sm:$0xff] }
  0x3a   :  { %1165 = vmatprep.subr.bf16.mxu0 %v1250_v0  ;;  %v1211_v18 = vpack.c.bf16 %v344_v17, %v343_v16 }
  0x3d   :  { %1167 = vmatpush3.bf16.msra.mxu0 %v1166_v20  ;;  %v346_v20 = vld [vmem:[%s1662_s9 + $0x68] sm:$0xff] }
  0x3e   :  { %1168 = vmatprep.subr.bf16.mxu0 %v1250_v0 }
  0x41   :  { %1170 = vmatpush3.bf16.msra.mxu0 %v1169_v58 }
  0x42   :  { %1195 = vmatprep.subr.bf16.mxu0 %v1250_v0 }
  0xf6   :  { %v119_v27 = vpop.f32.mrb[0].mxu0 }
  0xf7   :  { %157 = vadd.xlane.f32.xlu0 %v119_v27  ;;  %v948_v28 = vpop.f32.mrb[1].mxu0 }
  0xfb   :  { %349 = vadd.xlane.f32.xlu0 %v123_v29 }
 0x184   :  { %v158_v42 = vpop.xlane.xlu0 %157 }
 0x185   :  { %v160_v43 = vmul.f32 0.0078125, %v158_v42 }
 0x187   :  { %v1406_v44 = vsub.f32 %v119_v27, %v160_v43  ;;  %v1172_v27 = vpack.c.bf16 %v317_v25, %v316_v24  ;;  %v1184_v43 = vpack.c.bf16 %v325_v41, %v324_v40  ;;  %v822_v24 = vld [vmem:[%s1663_s8] ss:$0 sm:$0xff] }
 0x188   :  { %v350_v45 = vpop.xlane.xlu0 %349 }
 0x189   :  { %v351_v46 = vmul.f32 0.0078125, %v350_v45  ;;  %v162_v47 = vmul.f32 %v1406_v44, %v1406_v44  ;;  %v327_v45 = vld [vmem:[%s1660_s7 + $0x58] sm:$0xff] }
 0x18b   :  { %v1410_v48 = vsub.f32 %v123_v29, %v351_v46  ;;  %163 = vadd.xlane.f32.xlu1 %v162_v47  ;;  %v318_v29 = vld [vmem:[%s1660_s7 + $0x10] sm:$0xff]  ;;  %v328_v47 = vld [vmem:[%s1660_s7 + $0x60] sm:$0xff] }
 0x18c   :  { %v1175_v31 = vpack.c.bf16 %v319_v30, %v318_v29 }
 0x18d   :  { %v353_v49 = vmul.f32 %v1410_v48, %v1410_v48 }
 0x18f   :  { %354 = vadd.xlane.f32.xlu1 %v353_v49  ;;  %v329_v49 = vld [vmem:[%s1660_s7 + $0x68] sm:$0xff] }
 0x190   :  { %v1190_v50 = vpack.c.bf16 %v329_v49, %v328_v47 }
 0x218   :  { %v164_v21 = vpop.xlane.xlu1 %163 }
 0x219   :  { %v165_v22 = vmul.f32 0.0078125, %v164_v21  ;;  %v1214_v21 = vpack.c.bf16 %v346_v20, %v345_v19 }
 0x21b   :  { %v166_v23 = vadd.f32 1e-05, %v165_v22  ;;  %v347_v22 = vld [vmem:[%s1662_s9 + $0x70] sm:$0xff] }
 0x21c   :  { %v355_v35 = vpop.xlane.xlu1 %354 }
 0x21d   :  { %1230 = vrsqrt.f32 %v166_v23  ;;  %v356_v38 = vmul.f32 0.0078125, %v355_v35  ;;  %v348_v23 = vld [vmem:[%s1662_s9 + $0x78] sm:$0xff] }
 0x21e   :  { %v1217_v25 = vpack.c.bf16 %v348_v23, %v347_v22 }
 0x21f   :  { %v357_v42 = vadd.f32 1e-05, %v356_v38 }
 0x221   :  { %1232 = vrsqrt.f32 %v357_v42 }
 0x227   :  { %v1231_v26 = vpop.eup %1230 }
 0x228   :  { %v168_v28 = vmul.f32 %v1231_v26, %v1406_v44  ;;  %v326_v44 = vld [vmem:[%s1660_s7 + $0x50] sm:$0xff] }
 0x229   :  { %v1187_v46 = vpack.c.bf16 %v327_v45, %v326_v44 }
 0x22a   :  { %982 = vmatmul.mubr.f32.vlgmr.msra.gmra.mrb[0].mxu1 %v168_v28 }
 0x22b   :  { %1173 = vmatpush3.bf16.msra.mxu1 %v1172_v27  ;;  %1051 = vmatprep.mubr.msk.f32.mxu1 %vm1251_vm0, %v1252_v4  ;;  %v1233_v54 = vpop.eup %1232 }
 0x22c   :  { %1174 = vmatprep.subr.bf16.mxu1 %v1250_v0  ;;  %v359_v55 = vmul.f32 %v1233_v54, %v1410_v48  ;;  %v821_v48 = vld [vmem:[%s1661_s5] ss:$0 sm:$0xff]  ;;  %v604_v54 = vstv %s1664_s0 }
 0x22f   :  { %1176 = vmatpush3.bf16.msra.mxu1 %v1175_v31 }
 0x230   :  { %1177 = vmatprep.subr.bf16.mxu1 %v1250_v0 }
 0x233   :  { %1179 = vmatpush3.bf16.msra.mxu1 %v1178_v34 }
 0x234   :  { %1180 = vmatprep.subr.bf16.mxu1 %v1250_v0 }
 0x237   :  { %1182 = vmatpush3.bf16.msra.mxu1 %v1181_v39 }
 0x238   :  { %1183 = vmatprep.subr.bf16.mxu1 %v1250_v0 }
 0x23b   :  { %1185 = vmatpush3.bf16.msra.mxu1 %v1184_v43 }
 0x23c   :  { %1186 = vmatprep.subr.bf16.mxu1 %v1250_v0 }
 0x23f   :  { %1188 = vmatpush3.bf16.msra.mxu1 %v1187_v46 }
 0x240   :  { %1189 = vmatprep.subr.bf16.mxu1 %v1250_v0 }
 0x243   :  { %1191 = vmatpush3.bf16.msra.mxu1 %v1190_v50 }
 0x244   :  { %1192 = vmatprep.subr.bf16.mxu1 %v1250_v0 }
 0x247   :  { %1194 = vmatpush3.bf16.msra.mxu1 %v1193_v53 }
 0x248   :  { %1089 = vmatprep.subr.mxu1 %v1252_v4 }
 0x24a   :  { %1052 = vmatmul.mubr.f32.vlgmr.msra.gmra.mrb[2].mxu1 %v359_v55 }
 0x24b   :  { %1091 = vmatprep.mubr.msk.f32.mxu1 %vm1251_vm0, %v1252_v4 }
 0x2fd   :  { %v241_v61 = vpop.f32.mrb[0].mxu1 }
 0x2fe   :  { %v242_v62 = vadd.f32 %v821_v48, %v241_v61  ;;  %v983_v63 = vpop.f32.mrb[1].mxu1 }
 0x300   :  { %v245_v2 = vmax.f32 %v242_v62, 0.0  ;;  %v606_v62 = vlaneseq }
 0x302   :  { %1017 = vmatmul.mubr.f32.vlgmr.msra.gmra.mrb[2].mxu0 %v245_v2  ;;  %v607_v16 = vshrl.u32 %v606_v62, 7 }
 0x303   :  { %1197 = vmatpush3.bf16.msra.mxu0 %v1196_v1  ;;  %1086 = vmatprep.mubr.msk.f32.mxu0 %vm1251_vm0, %v1252_v4  ;;  %v1631_v1 = vand.u32 127, %v606_v62 }
 0x304   :  { %1198 = vmatprep.subr.bf16.mxu0 %v1250_v0 }
 0x305   :  { %vm610_vm8 = vcmp.eq.s32.totalorder %v607_v16, %v1631_v1  ;;  %vm803_vm14 = vcmp.eq.s32.totalorder %v1631_v1, 0  ;;  %vm805_vm15 = vcmp.eq.s32.totalorder %v1631_v1, 1 }
 0x307   :  { %1200 = vmatpush3.bf16.msra.mxu0 %v1199_v6 }
 0x308   :  { %1201 = vmatprep.subr.bf16.mxu0 %v1250_v0 }
 0x30b   :  { %1203 = vmatpush3.bf16.msra.mxu0 %v1202_v9 }
 0x30c   :  { %1204 = vmatprep.subr.bf16.mxu0 %v1250_v0 }
 0x30f   :  { %1206 = vmatpush3.bf16.msra.mxu0 %v1205_v12 }
 0x310   :  { %1207 = vmatprep.subr.bf16.mxu0 %v1250_v0 }
 0x313   :  { %1209 = vmatpush3.bf16.msra.mxu0 %v1208_v15 }
 0x314   :  { %1210 = vmatprep.subr.bf16.mxu0 %v1250_v0 }
 0x317   :  { %1212 = vmatpush3.bf16.msra.mxu0 %v1211_v18 }
 0x318   :  { %1213 = vmatprep.subr.bf16.mxu0 %v1250_v0 }
 0x31b   :  { %1215 = vmatpush3.bf16.msra.mxu0 %v1214_v21 }
 0x31c   :  { %1216 = vmatprep.subr.bf16.mxu0 %v1250_v0 }
 0x31d   :  { %v432_v26 = vpop.f32.mrb[2].mxu1 }
 0x31e   :  { %v433_v27 = vadd.f32 %v822_v24, %v432_v26  ;;  %v1053_v28 = vpop.f32.mrb[3].mxu1 }
 0x31f   :  { %1218 = vmatpush3.bf16.msra.mxu0 %v1217_v25 }
 0x320   :  { %v436_v29 = vmax.f32 %v433_v27, 0.0 }
 0x322   :  { %1087 = vmatmul.mubr.f32.vlgmr.msra.gmra.mrb[4].mxu0 %v436_v29 }
 0x3d5   :  { %v312_v30 = vpop.f32.mrb[2].mxu0 }
 0x3d6   :  { %v1018_v31 = vpop.f32.mrb[3].mxu0  ;;  %v507_v32 = vmul.f32 %v312_v30, %v312_v30 }
 0x3d8   :  { %508 = vadd.xlane.f32.xlu1 %v507_v32 }
 0x3f5   :  { %v503_v33 = vpop.f32.mrb[4].mxu0 }
 0x3f6   :  { %v1088_v34 = vpop.f32.mrb[5].mxu0  ;;  %v520_v35 = vmul.f32 %v503_v33, %v503_v33 }
 0x3f8   :  { %521 = vadd.xlane.f32.xlu0 %v520_v35 }
 0x465   :  { %v509_v36 = vpop.xlane.xlu1 %508 }
 0x466   :  { %1234 = vrsqrt.f32 %v509_v36  ;;  %vm512_vm1 = vcmp.eq.f32.partialorder %v509_v36, inf  ;;  %v515_v40 = vand.u32 2147483648, %v509_v36  ;;  %vm514_vm2 = vcmp.eq.f32.partialorder %v509_v36, 0.0 }
 0x470   :  { %v1235_v38 = vpop.eup %1234 }
 0x471   :  { %v511_v0 = vmul.f32 %v1235_v38, %v509_v36 }
 0x473   :  { %v513_v39 = vsel %vm512_vm1, %v509_v36, %v511_v0  ;;  %vm812_vm1 = vcmp.eq.s32.totalorder %v1631_v1, 3 }
 0x474   :  { %v516_v42 = vsel %vm514_vm2, %v515_v40, %v513_v39 }
 0x475   :  { %v517_v46 = vmax.f32 %v516_v42, 1e-12 }
 0x485   :  { %v522_v37 = vpop.xlane.xlu0 %521 }
 0x486   :  { %1236 = vrsqrt.f32 %v522_v37  ;;  %vm525_vm3 = vcmp.eq.f32.partialorder %v522_v37, inf  ;;  %v528_v44 = vand.u32 2147483648, %v522_v37  ;;  %vm527_vm4 = vcmp.eq.f32.partialorder %v522_v37, 0.0 }
 0x490   :  { %v1237_v41 = vpop.eup %1236 }
 0x491   :  { %v524_v43 = vmul.f32 %v1237_v41, %v522_v37 }
 0x493   :  { %v526_v45 = vsel %vm525_vm3, %v522_v37, %v524_v43 }
 0x494   :  { %v529_v47 = vsel %vm527_vm4, %v528_v44, %v526_v45 }
 0x495   :  { %v530_v49 = vmax.f32 %v529_v47, 1e-12 }
 0x497   :  { %1238 = vrcp.f32 %v530_v49 }
 0x498   :  { %1240 = vrcp.f32 %v517_v46 }
 0x4a1   :  { %v1239_v50 = vpop.eup %1238 }
 0x4a2   :  { %v1241_v51 = vpop.eup %1240  ;;  %v532_v52 = vmul.f32 %v1239_v50, %v503_v33 }
 0x4a3   :  { %v519_v53 = vmul.f32 %v1241_v51, %v312_v30 }
 0x4a4   :  { %1090 = vmatpush3.xpose.msra.mxu1 %v532_v52 }
 0x4a5   :  { %1094 = vmatprep.subr.mxu1 %v1252_v4 }
 0x4a7   :  { %1092 = vmatmul.mubr.f32.vlgmr.msra.gmra.mrb[4].mxu1 %v519_v53 }
 0x4a8   :  { %1095 = vmatpush3.xpose.msra.mxu1 %v519_v53  ;;  %1096 = vmatprep.mubr.msk.f32.mxu1 %vm1251_vm0, %v1252_v4  ;;  %vm808_vm0 = vcmp.eq.s32.totalorder %v1631_v1, 2 }
 0x4ab   :  { %1097 = vmatmul.mubr.f32.vlgmr.msra.gmra.mrb[6].mxu1 %v532_v52 }
 0x57a   :  { %v600_v55 = vpop.f32.mrb[4].mxu1 }
 0x57b   :  { %v605_v56 = vmul.f32 %v604_v54, %v600_v55  ;;  %v1093_v57 = vpop.f32.mrb[5].mxu1 }
 0x57d   :  { %v616_v58 = vsel %vm612_vm5, %v605_v56, -inf  ;;  %v611_v21 = vsel %vm610_vm8, %v605_v56, 0.0 }
 0x57e   :  { %v739_v48 = vpop.f32.mrb[6].mxu1  ;;  %617 = vmax.xlane.f32.xlu0 %v616_v58  ;;  %v613_v22 = vsel %vm612_vm5, %v611_v21, 0.0 }
 0x57f   :  { %v743_v59 = vmul.f32 %v739_v48, %v604_v54  ;;  %v1098_v60 = vpop.f32.mrb[7].mxu1 }
 0x581   :  { %v748_v61 = vsel %vm612_vm5, %v743_v59, -inf  ;;  %v744_v28 = vsel %vm610_vm8, %v743_v59, 0.0 }
 0x582   :  { %749 = vmax.xlane.f32.xlu1 %v748_v61  ;;  %v745_v31 = vsel %vm612_vm5, %v744_v28, 0.0 }
 0x60b   :  { %v618_v63 = vpop.xlane.xlu0 %617 }
 0x60c   :  { %v619_v2 = vsub.f32 %v605_v56, %v618_v63  ;;  %vm643_vm6 = vcmp.ge.f32.partialorder %v605_v56, %v618_v63 }
 0x60d   :  { %v644_v3 = vsel %vm643_vm6, %v1631_v1, 8 }
 0x60e   :  { %v620_v5 = vmul.f32 1.442695, %v619_v2  ;;  %v645_v6 = vsel %vm612_vm5, %v644_v3, 2147483647 }
 0x60f   :  { %v750_v7 = vpop.xlane.xlu1 %749  ;;  %v647_v8 = vshra.s32 %v645_v6, 16  ;;  %v646_v23 = vand.u32 65535, %v645_v6 }
 0x610   :  { %1242 = vpow2.f32 %v620_v5  ;;  %v751_v9 = vsub.f32 %v743_v59, %v750_v7  ;;  %vm773_vm7 = vcmp.ge.f32.partialorder %v743_v59, %v750_v7 }
 0x611   :  { %v649_v10 = vcvt.s32.f32 %v647_v8  ;;  %v774_v11 = vsel %vm773_vm7, %v1631_v1, 8  ;;  %v648_v25 = vcvt.s32.f32 %v646_v23 }
 0x612   :  { %v752_v12 = vmul.f32 1.442695, %v751_v9  ;;  %v775_v13 = vsel %vm612_vm5, %v774_v11, 2147483647 }
 0x613   :  { %650 = vmin.xlane.f32.xlu0 %v649_v10  ;;  %v777_v14 = vshra.s32 %v775_v13, 16  ;;  %v776_v26 = vand.u32 65535, %v775_v13 }
 0x614   :  { %1244 = vpow2.f32 %v752_v12 }
 0x615   :  { %v779_v15 = vcvt.s32.f32 %v777_v14  ;;  %v778_v30 = vcvt.s32.f32 %v776_v26 }
 0x617   :  { %780 = vmin.xlane.f32.xlu1 %v779_v15 }
 0x61a   :  { %v1243_v17 = vpop.eup %1242 }
 0x61b   :  { %v622_v18 = vsel %vm612_vm5, %v1243_v17, 0.0 }
 0x61c   :  { %623 = vadd.xlane.f32.xlu0 %v622_v18 }
 0x61e   :  { %v1245_v19 = vpop.eup %1244 }
 0x61f   :  { %v754_v20 = vsel %vm612_vm5, %v1245_v19, 0.0 }
 0x620   :  { %755 = vadd.xlane.f32.xlu1 %v754_v20 }
 0x624   :  { %614 = vadd.xlane.f32.xlu1 %v613_v22 }
 0x6a0   :  { %v651_v24 = vpop.xlane.xlu0 %650 }
 0x6a1   :  { %vm652_vm9 = vcmp.eq.f32.partialorder %v649_v10, %v651_v24  ;;  %v657_v41 = vcvt.f32.s32 %v651_v24 }
 0x6a2   :  { %v653_v27 = vsel %vm652_vm9, %v648_v25, inf }
 0x6a3   :  { %654 = vmin.xlane.f32.xlu0 %v653_v27  ;;  %v658_v44 = vshll.u32 %v657_v41, 16 }
 0x6a4   :  { %v781_v29 = vpop.xlane.xlu1 %780 }
 0x6a5   :  { %vm782_vm10 = vcmp.eq.f32.partialorder %v779_v15, %v781_v29  ;;  %v787_v45 = vcvt.f32.s32 %v781_v29 }
 0x6a6   :  { %v783_v32 = vsel %vm782_vm10, %v778_v30, inf }
 0x6a7   :  { %746 = vadd.xlane.f32.xlu0 %v745_v31  ;;  %784 = vmin.xlane.f32.xlu1 %v783_v32  ;;  %v788_v52 = vshll.u32 %v787_v45, 16 }
 0x6a9   :  { %v624_v33 = vpop.xlane.xlu0 %623 }
 0x6aa   :  { %1246 = vlog2.f32 %v624_v33 }
 0x6ad   :  { %v756_v34 = vpop.xlane.xlu1 %755 }
 0x6ae   :  { %1248 = vlog2.f32 %v756_v34 }
 0x6b1   :  { %v615_v38 = vpop.xlane.xlu1 %614 }
 0x6b4   :  { %v1247_v35 = vpop.eup %1246 }
 0x6b5   :  { %v626_v36 = vmul.f32 0.6931472, %v1247_v35 }
 0x6b7   :  { %v627_v37 = vadd.f32 %v626_v36, %v618_v63 }
 0x6b8   :  { %v1249_v40 = vpop.eup %1248 }
 0x6b9   :  { %v628_v0 = vsub.f32 %v627_v37, %v615_v38  ;;  %v758_v42 = vmul.f32 0.6931472, %v1249_v40 }
 0x6bb   :  { %v630_v39 = vsel %vm629_vm11, %v628_v0, 0.0  ;;  %v759_v49 = vadd.f32 %v758_v42, %v750_v7 }
 0x6bc   :  { %631 = vadd.xlane.f32.xlu0 %v630_v39 }
 0x730   :  { %v655_v43 = vpop.xlane.xlu0 %654 }
 0x731   :  { %v656_v46 = vcvt.f32.s32 %v655_v43 }
 0x733   :  { %v659_v47 = vadd.s32 %v658_v44, %v656_v46 }
 0x734   :  { %v747_v50 = vpop.xlane.xlu0 %746  ;;  %v785_v51 = vpop.xlane.xlu1 %784 }
 0x735   :  { %v760_v53 = vsub.f32 %v759_v49, %v747_v50  ;;  %v786_v54 = vcvt.f32.s32 %v785_v51  ;;  %vm660_vm12 = vcmp.eq.s32.totalorder %v659_v47, %v607_v16 }
 0x736   :  { %v823_v55 = vsel %vm660_vm12, 1.0, %v1252_v4 }
 0x737   :  { %v789_v56 = vadd.s32 %v788_v52, %v786_v54  ;;  %v663_v57 = vsel %vm629_vm11, %v823_v55, 0.0  ;;  %v761_v58 = vsel %vm629_vm11, %v760_v53, 0.0 }
 0x738   :  { %664 = vadd.xlane.f32.xlu1 %v663_v57  ;;  %762 = vadd.xlane.f32.xlu0 %v761_v58 }
 0x739   :  { %vm790_vm13 = vcmp.eq.s32.totalorder %v789_v56, %v607_v16 }
 0x73a   :  { %v824_v48 = vsel %vm790_vm13, 1.0, %v1252_v4 }
 0x73b   :  { %v793_v59 = vsel %vm629_vm11, %v824_v48, 0.0 }
 0x73c   :  { %794 = vadd.xlane.f32.xlu1 %v793_v59 }
 0x749   :  { %v632_v60 = vpop.xlane.xlu0 %631 }
 0x74a   :  { %v633_v61 = vrot.slane %v632_v60, 4 }
 0x74c   :  { %v634_v62 = vadd.f32 %v633_v61, %v632_v60 }
 0x74e   :  { %v635_v63 = vrot.slane %v634_v62, 2 }
 0x750   :  { %v636_v2 = vadd.f32 %v635_v63, %v634_v62 }
 0x752   :  { %v637_v3 = vrot.slane %v636_v2, 1 }
 0x754   :  { %v638_v5 = vadd.f32 %v637_v3, %v636_v2 }
 0x756   :  { %1219 = vpush %v638_v5 }
 0x787   :  { %s1220_s0 = spop %1219 }
 0x788   :  { %v640_v26 = vstv %s1220_s0 }
 0x789   :  { %v642_v27 = vmul.f32 0.125, %v640_v26 }
 0x78b   :  { %v804_v31 = vsel %vm803_vm14, %v642_v27, 0.0 }
 0x7c5   :  { %v763_v6 = vpop.xlane.xlu0 %762  ;;  %v665_v7 = vpop.xlane.xlu1 %664 }
 0x7c6   :  { %v764_v8 = vrot.slane %v763_v6, 4  ;;  %v666_v9 = vrot.slane %v665_v7, 4 }
 0x7c8   :  { %v765_v10 = vadd.f32 %v764_v8, %v763_v6  ;;  %v667_v11 = vadd.f32 %v666_v9, %v665_v7 }
 0x7c9   :  { %v795_v12 = vpop.xlane.xlu1 %794 }
 0x7ca   :  { %v766_v13 = vrot.slane %v765_v10, 2  ;;  %v668_v4 = vrot.slane %v667_v11, 2  ;;  %v796_v14 = vrot.slane %v795_v12, 4 }
 0x7cc   :  { %v767_v15 = vadd.f32 %v766_v13, %v765_v10  ;;  %v797_v16 = vadd.f32 %v796_v14, %v795_v12  ;;  %v669_v17 = vadd.f32 %v668_v4, %v667_v11 }
 0x7ce   :  { %v798_v18 = vrot.slane %v797_v16, 2  ;;  %v670_v19 = vrot.slane %v669_v17, 1  ;;  %v768_v20 = vrot.slane %v767_v15, 1 }
 0x7d0   :  { %v799_v21 = vadd.f32 %v798_v18, %v797_v16  ;;  %v671_v22 = vadd.f32 %v670_v19, %v669_v17  ;;  %v769_v23 = vadd.f32 %v768_v20, %v767_v15 }
 0x7d2   :  { %1221 = vpush %v671_v22  ;;  %v800_v24 = vrot.slane %v799_v21, 1 }
 0x7d3   :  { %1223 = vpush %v769_v23 }
 0x7d4   :  { %v801_v25 = vadd.f32 %v800_v24, %v799_v21 }
 0x7d6   :  { %1225 = vpush %v801_v25 }
 0x803   :  { %s1222_s3 = spop %1221 }
 0x804   :  { %s1224_s5 = spop %1223  ;;  %v809_v30 = vstv %s1222_s3 }
 0x805   :  { %v771_v28 = vstv %s1224_s5  ;;  %v810_v35 = vsel %vm808_vm0, %v809_v30, 0.0 }
 0x806   :  { %v772_v29 = vmul.f32 0.125, %v771_v28 }
 0x807   :  { %s1226_s15 = spop %1225 }
 0x808   :  { %v806_v32 = vsel %vm805_vm15, %v772_v29, 0.0  ;;  %v813_v34 = vstv %s1226_s15 }
 0x809   :  { %v807_v33 = vadd.f32 %v806_v32, %v804_v31  ;;  %v814_v37 = vsel %vm812_vm1, %v813_v34, 0.0 }
 0x80b   :  { %v811_v36 = vadd.f32 %v810_v35, %v807_v33 }
 0x80d   :  { %v815_v38 = vadd.f32 %v814_v37, %v811_v36 }
 0x80f   :  { %816 = vst [vmem:[%s1665_s10] sm:$0x1] %v815_v38 }

</bundles_post_ra>
